<compile_context>
chip_gen: v5e
topology: v5e:2x2
jax: 0.10.0
libtpu: 0.0.40
codegen_flags: <defaults>
</compile_context>

<pallas_src>
import math
import functools

import jax
import jax.numpy as jnp
from jax.experimental import pallas as pl
from jax.experimental.pallas import tpu as pltpu

_EPS = 1e-5


def _entropy_rows(p):
    """Per-row entropy of Categorical(probs=p_row); p is (T, C) float32 -> (T, 1)."""
    min_real = jnp.finfo(jnp.float32).min
    logp = jnp.maximum(jnp.log(p), min_real)              # p==0 -> 0 * min_real == 0
    tot = jnp.sum(p, axis=-1, keepdims=True)              # (T, 1)
    plogp = jnp.sum(p * logp, axis=-1, keepdims=True)     # (T, 1)
    return jnp.log(tot) - plogp * pl.reciprocal(tot, approx=False)


def _clamped_kernel(u_ref, s_ref, out_ref, *, max_ent):
    """mean=False: per-row clamp(H(u) - H(s), eps, log C)."""
    u = u_ref[...].astype(jnp.float32)
    s = s_ref[...].astype(jnp.float32)
    d = _entropy_rows(u) - _entropy_rows(s)               # (T, 1)
    out_ref[...] = jnp.clip(d, _EPS, max_ent)


def _sum_kernel(u_ref, s_ref, sum_ref):
    """mean=True: accumulate sum_i (H(u_i) - H(s_i)) into a resident (1, 1) output."""
    @pl.when(pl.program_id(0) == 0)
    def _():
        sum_ref[...] = jnp.zeros_like(sum_ref)

    u = u_ref[...].astype(jnp.float32)
    s = s_ref[...].astype(jnp.float32)
    d = _entropy_rows(u) - _entropy_rows(s)               # (T, 1)
    sum_ref[...] += jnp.sum(d, axis=0, keepdims=True)     # (1, 1)


def _pick_tile(n, c, itemsize):
    # Keep 2 inputs x 2 pipeline buffers x tile x C x itemsize within ~8 MiB so
    # the double-buffered footprint fits comfortably under v7x's 64 MiB physical
    # VMEM while still being large (up to 2048 rows) to sit near the HBM
    # roofline and amortize the ~0.35 us per-grid-step overhead on v5e/v6e.
    budget = 8 * 1024 * 1024
    per_row = 2 * 2 * c * max(itemsize, 1)
    tile = max(8, min(2048, budget // per_row))
    tile = (tile // 8) * 8                                # f32 sublane multiple
    n8 = -(-n // 8) * 8
    return min(tile, n8)


def discrepancy_loss(universal_probs, specific_probs, *, margin=1.0, mean=False):
    """JAX/Pallas equivalent of DiscrepancyLoss.forward."""
    assert universal_probs.shape == specific_probs.shape
    assert universal_probs.ndim == 2
    N, C = universal_probs.shape
    max_ent = math.log(C)                                 # H(uniform over C classes)

    tile = _pick_tile(N, C, jnp.dtype(universal_probs.dtype).itemsize)
    num_tiles = pl.cdiv(N, tile)
    n_pad = num_tiles * tile
    if n_pad != N:
        # Pad with all-ones rows: H(u_pad) == H(s_pad) so discrepancy == 0 there;
        # padded rows neither contaminate the fused mean nor the sliced output.
        pad = ((0, n_pad - N), (0, 0))
        universal_probs = jnp.pad(universal_probs, pad, constant_values=1.0)
        specific_probs = jnp.pad(specific_probs, pad, constant_values=1.0)

    in_specs = [
        pl.BlockSpec((tile, C), lambda i: (i, 0)),
        pl.BlockSpec((tile, C), lambda i: (i, 0)),
    ]

    if mean:
        total = pl.pallas_call(
            _sum_kernel,
            grid=(num_tiles,),
            in_specs=in_specs,
            out_specs=pl.BlockSpec((1, 1), lambda i: (0, 0)),
            out_shape=jax.ShapeDtypeStruct((1, 1), jnp.float32),
            compiler_params=pltpu.CompilerParams(
                dimension_semantics=("arbitrary",),
                vmem_limit_bytes=64 << 20),
        )(universal_probs, specific_probs)
        # hinge: max(0, margin - mean(discrepancy))  (scalar glue in plain JAX)
        return jnp.maximum(jnp.float32(0.0),
                           jnp.float32(margin) - total[0, 0] / jnp.float32(N))

    clamped = pl.pallas_call(
        functools.partial(_clamped_kernel, max_ent=max_ent),
        grid=(num_tiles,),
        in_specs=in_specs,
        out_specs=pl.BlockSpec((tile, 1), lambda i: (i, 0)),
        out_shape=jax.ShapeDtypeStruct((n_pad, 1), jnp.float32),
        compiler_params=pltpu.CompilerParams(
            dimension_semantics=("parallel",),
            vmem_limit_bytes=64 << 20),
    )(universal_probs, specific_probs)
    return clamped[:N, 0]


if __name__ == "__main__":
    key = jax.random.PRNGKey(0)
    N, C = 8, 32  # small synthetic shapes: batch=8 rows, 32 classes

    k1, k2 = jax.random.split(key)
    universal_probs = jax.nn.softmax(jax.random.normal(k1, (N, C), jnp.float32), axis=-1)
    specific_probs = jax.nn.softmax(jax.random.normal(k2, (N, C), jnp.float32), axis=-1)

    # default mode (mean=False): per-sample clamped discrepancy, shape (N,)
    loss_vec = jax.block_until_ready(
        discrepancy_loss(universal_probs, specific_probs, margin=1.0, mean=False))

    # mean mode: scalar hinge loss (fused in-kernel sum)
    loss_mean = jax.block_until_ready(
        discrepancy_loss(universal_probs, specific_probs, margin=1.0, mean=True))

    # pure-JAX reference
    def _ref_entropy(p):
        pn = p / jnp.sum(p, axis=-1, keepdims=True)
        return -jnp.sum(pn * jnp.log(pn), axis=-1)

    ref_d = _ref_entropy(universal_probs) - _ref_entropy(specific_probs)
    ref_vec = jnp.clip(ref_d, 1e-5, math.log(C))
    ref_mean = jnp.maximum(jnp.float32(0.0), jnp.float32(1.0) - jnp.mean(ref_d))

    assert loss_vec.shape == (N,)
    assert jnp.allclose(loss_vec, ref_vec, atol=1e-4), (loss_vec, ref_vec)
    assert jnp.allclose(loss_mean, ref_mean, atol=1e-4), (loss_mean, ref_mean)

    print("KERNEL_OK")
</pallas_src>

<mosaic_0001>
module attributes {stable_mosaic.version = 11 : i64} {
  func.func @_clamped_kernel(%arg0: i32, %arg1: memref<8x32xf32, #tpu.memory_space<vmem>>, %arg2: memref<8x32xf32, #tpu.memory_space<vmem>>, %arg3: memref<8x1xf32, #tpu.memory_space<vmem>>) attributes {dimension_semantics = [#tpu.dimension_semantics<parallel>], iteration_bounds = array<i64: 1>, scalar_prefetch = 0 : i64, scratch_operands = 0 : i64, tpu.core_type = #tpu.core_type<tc>, window_params = [{transform_indices = @transform_0, window_bounds = array<i64: 8, 32>}, {transform_indices = @transform_1, window_bounds = array<i64: 8, 32>}, {transform_indices = @transform_2, window_bounds = array<i64: 8, 1>}]} {
    %c0 = arith.constant 0 : index
    %c0_0 = arith.constant 0 : index
    %0 = vector.load %arg1[%c0, %c0_0] : memref<8x32xf32, #tpu.memory_space<vmem>>, vector<8x32xf32>
    %c0_1 = arith.constant 0 : index
    %c0_2 = arith.constant 0 : index
    %1 = vector.load %arg2[%c0_1, %c0_2] : memref<8x32xf32, #tpu.memory_space<vmem>>, vector<8x32xf32>
    %2 = math.log %0 : vector<8x32xf32>
    %cst = arith.constant -3.40282347E+38 : f32
    %3 = vector.broadcast %cst : f32 to vector<8x32xf32>
    %4 = arith.maximumf %2, %3 : vector<8x32xf32>
    %cst_3 = arith.constant dense<0.000000e+00> : vector<8xf32>
    %5 = vector.multi_reduction <add>, %0, %cst_3 [1] : vector<8x32xf32> to vector<8xf32>
    %6 = vector.shape_cast %5 : vector<8xf32> to vector<8x1xf32>
    %7 = arith.mulf %0, %4 : vector<8x32xf32>
    %cst_4 = arith.constant dense<0.000000e+00> : vector<8xf32>
    %8 = vector.multi_reduction <add>, %7, %cst_4 [1] : vector<8x32xf32> to vector<8xf32>
    %9 = vector.shape_cast %8 : vector<8xf32> to vector<8x1xf32>
    %10 = math.log %6 : vector<8x1xf32>
    %11 = tpu.reciprocal %6 : vector<8x1xf32> -> vector<8x1xf32>
    %12 = arith.mulf %9, %11 : vector<8x1xf32>
    %13 = arith.subf %10, %12 : vector<8x1xf32>
    %14 = math.log %1 : vector<8x32xf32>
    %cst_5 = arith.constant -3.40282347E+38 : f32
    %15 = vector.broadcast %cst_5 : f32 to vector<8x32xf32>
    %16 = arith.maximumf %14, %15 : vector<8x32xf32>
    %cst_6 = arith.constant dense<0.000000e+00> : vector<8xf32>
    %17 = vector.multi_reduction <add>, %1, %cst_6 [1] : vector<8x32xf32> to vector<8xf32>
    %18 = vector.shape_cast %17 : vector<8xf32> to vector<8x1xf32>
    %19 = arith.mulf %1, %16 : vector<8x32xf32>
    %cst_7 = arith.constant dense<0.000000e+00> : vector<8xf32>
    %20 = vector.multi_reduction <add>, %19, %cst_7 [1] : vector<8x32xf32> to vector<8xf32>
    %21 = vector.shape_cast %20 : vector<8xf32> to vector<8x1xf32>
    %22 = math.log %18 : vector<8x1xf32>
    %23 = tpu.reciprocal %18 : vector<8x1xf32> -> vector<8x1xf32>
    %24 = arith.mulf %21, %23 : vector<8x1xf32>
    %25 = arith.subf %22, %24 : vector<8x1xf32>
    %26 = arith.subf %13, %25 : vector<8x1xf32>
    %cst_8 = arith.constant 9.99999974E-6 : f32
    %cst_9 = arith.constant 3.46573591 : f32
    %27 = vector.broadcast %cst_8 : f32 to vector<8x1xf32>
    %28 = arith.maximumf %27, %26 : vector<8x1xf32>
    %29 = vector.broadcast %cst_9 : f32 to vector<8x1xf32>
    %30 = arith.minimumf %29, %28 : vector<8x1xf32>
    %c0_10 = arith.constant 0 : index
    %c0_11 = arith.constant 0 : index
    %31 = vector.load %arg3[%c0_10, %c0_11] : memref<8x1xf32, #tpu.memory_space<vmem>>, vector<8x1xf32>
    tpu.vector_store %arg3[%c0_10, %c0_11], %30 {strides = array<i32>} : memref<8x1xf32, #tpu.memory_space<vmem>>, vector<8x1xf32>,
    return
  }
  func.func @transform_0(%arg0: i32) -> (i32, i32) {
    %c0_i32 = arith.constant 0 : i32
    %c0_i32_0 = arith.constant 0 : i32
    return %arg0, %c0_i32 : i32, i32
  }
  func.func @transform_1(%arg0: i32) -> (i32, i32) {
    %c0_i32 = arith.constant 0 : i32
    %c0_i32_0 = arith.constant 0 : i32
    return %arg0, %c0_i32 : i32, i32
  }
  func.func @transform_2(%arg0: i32) -> (i32, i32) {
    %c0_i32 = arith.constant 0 : i32
    %c0_i32_0 = arith.constant 0 : i32
    return %arg0, %c0_i32 : i32, i32
  }
}

</mosaic_0001>

<bundles_post_ra>
// kernel: tpu_custom_call.1
= control target key start
LH: loop header
LB: loop body
LE: loop exit
PB: predicated region body
PF: predicated region fallthrough
CT: control target
= control target key end

     0   :  { %7 = vsyncpa [#allocation3], 0  ;;  %s205_s0 = inlined_call_operand.hbm [shape: f32[8,32], index: 0, kind: input, shape index: {}]   ;;  %s206_s1 = inlined_call_operand.hbm [shape: f32[8,32], index: 1, kind: input, shape index: {}]   ;;  %s207_s2 = inlined_call_operand.vmem [shape: f32[8,1], index: 2, kind: output, shape index: {}]  }
   0x1   :  { %s14_s11 = sshll.u32 %s205_s0, 4  ;;  %s15_s11 = int_to_ptr.hbm [resolvable:$true] %s14_s11 }
   0x2   :  { %8 = vsyncpa [#allocation5], 0  ;;  %s175_s12 = smov [#allocation2]   ;;  %s25_s16 = sshll.u32 %s206_s1, 4  ;;  %s26_s16 = int_to_ptr.hbm [resolvable:$true] %s25_s16 }
   0x3   :  { %s16_s13 = sshll.u32 %s175_s12, 4  ;;  %s176_s17 = smov [#allocation4]   ;;  %s17_s13 = int_to_ptr.vmem [resolvable:$true] %s16_s13 }
   0x4   :  { %19 = dma.hbm_to_vmem [thread:$0]  %s15_s11, 128, %s17_s13, [#allocation3]  }
   0x5   :  { %s27_s18 = sshll.u32 %s176_s17, 4  ;;  %s28_s18 = int_to_ptr.vmem [resolvable:$true] %s27_s18 }
   0x6   :  { %30 = dma.hbm_to_vmem [thread:$0]  %s26_s16, 128, %s28_s18, [#allocation5]  }
   0x7   :  { %171 = dma.done.wait [#allocation3], 128  }
   0x8   :  { %172 = vsyncadd [#allocation3], 4294967168 }
   0x9   :  { %173 = dma.done.wait [#allocation5], 128  }
   0xa   :  { %174 = vsyncadd [#allocation5], 4294967168  ;;  %vm44_vm0 = vcmask 261120   ;;  %v39_v0 = vld [vmem:[#allocation2] sm:$0xff]  ;;  %v40_v2 = vld [vmem:[#allocation4] sm:$0xff]  ;;  %vm101_vm9 = vcmask 7168  }
   0xb   :  { %v45_v1 = vsel %vm44_vm0, %v39_v0, 0.0  ;;  %111 = vlog2.f32 %v39_v0  ;;  %v73_v4 = vsel %vm44_vm0, %v40_v2, 0.0 }
   0xc   :  { %46 = vadd.xlane.f32.xlu0 %v45_v1  ;;  %113 = vlog2.f32 %v40_v2 }
  0x11   :  { %v112_v3 = vpop.eup %111 }
  0x12   :  { %v114_v5 = vpop.eup %113  ;;  %v42_v6 = vmul.f32 0.6931472, %v112_v3 }
  0x13   :  { %v71_v7 = vmul.f32 0.6931472, %v114_v5 }
  0x14   :  { %74 = vadd.xlane.f32.xlu0 %v73_v4  ;;  %v43_v8 = vmax.f32 %v42_v6, -3.4028235e+38 }
  0x15   :  { %v72_v10 = vmax.f32 %v71_v7, -3.4028235e+38 }
  0x16   :  { %v48_v9 = vmul.f32 %v43_v8, %v39_v0 }
  0x17   :  { %v76_v12 = vmul.f32 %v72_v10, %v40_v2 }
  0x18   :  { %v49_v11 = vsel %vm44_vm0, %v48_v9, 0.0 }
  0x19   :  { %50 = vadd.xlane.f32.xlu1 %v49_v11  ;;  %v77_v13 = vsel %vm44_vm0, %v76_v12, 0.0 }
  0x21   :  { %78 = vadd.xlane.f32.xlu1 %v77_v13 }
  0x7f   :  { %v47_v14 = vpop.xlane.xlu0 %46 }
  0x80   :  { %115 = vrcp.f32 %v47_v14  ;;  %v65_v23 = vand.u32 2147483648, %v47_v14  ;;  %vm59_vm2 = vweird.f32 %v47_v14  ;;  %v63_v25 = vand.u32 2147483647, %v47_v14 }
  0x82   :  { %v66_v28 = vor.u32 1.1754944e-38, %v65_v23  ;;  %vm64_vm4 = vcmp.eq.f32.partialorder %v63_v25, 8.507059e+37 }
  0x86   :  { %v116_v15 = vpop.eup %115 }
  0x87   :  { %v55_v16 = vmul.f32 %v116_v15, %v47_v14  ;;  %v75_v17 = vpop.xlane.xlu0 %74  ;;  %vm60_vm1 = vweird.f32 %v116_v15 }
  0x88   :  { %117 = vrcp.f32 %v75_v17  ;;  %vm61_vm3 = vmor %vm59_vm2, %vm60_vm1  ;;  %v93_v29 = vand.u32 2147483648, %v75_v17  ;;  %v91_v31 = vand.u32 2147483647, %v75_v17  ;;  %vm87_vm6 = vweird.f32 %v75_v17 }
  0x89   :  { %v56_v18 = vsub.f32 1.0, %v55_v16  ;;  %119 = vlog2.f32 %v47_v14 }
  0x8a   :  { %121 = vlog2.f32 %v75_v17  ;;  %v94_v36 = vor.u32 1.1754944e-38, %v93_v29  ;;  %vm92_vm8 = vcmp.eq.f32.partialorder %v91_v31, 8.507059e+37 }
  0x8b   :  { %v57_v19 = vmul.f32 %v116_v15, %v56_v18 }
  0x8c   :  { %v51_v20 = vpop.xlane.xlu1 %50 }
  0x8d   :  { %v58_v21 = vadd.f32 %v116_v15, %v57_v19 }
  0x8e   :  { %v118_v22 = vpop.eup %117 }
  0x8f   :  { %v83_v24 = vmul.f32 %v118_v22, %v75_v17  ;;  %v62_v27 = vsel %vm61_vm3, %v116_v15, %v58_v21  ;;  %vm88_vm5 = vweird.f32 %v118_v22  ;;  %v120_v33 = vpop.eup %119 }
  0x90   :  { %v67_v32 = vsel %vm64_vm4, %v66_v28, %v62_v27  ;;  %v122_v35 = vpop.eup %121  ;;  %vm89_vm7 = vmor %vm87_vm6, %vm88_vm5  ;;  %v53_v41 = vmul.f32 0.6931472, %v120_v33 }
  0x91   :  { %v84_v26 = vsub.f32 1.0, %v83_v24  ;;  %v68_v38 = vmul.f32 %v67_v32, %v51_v20  ;;  %v81_v42 = vmul.f32 0.6931472, %v122_v35 }
  0x93   :  { %v85_v30 = vmul.f32 %v118_v22, %v84_v26  ;;  %v69_v44 = vsub.f32 %v53_v41, %v68_v38 }
  0x94   :  { %v79_v37 = vpop.xlane.xlu1 %78 }
  0x95   :  { %v86_v34 = vadd.f32 %v118_v22, %v85_v30 }
  0x97   :  { %v90_v39 = vsel %vm89_vm7, %v118_v22, %v86_v34 }
  0x98   :  { %v95_v40 = vsel %vm92_vm8, %v94_v36, %v90_v39 }
  0x99   :  { %v96_v43 = vmul.f32 %v95_v40, %v79_v37 }
  0x9b   :  { %v97_v45 = vsub.f32 %v81_v42, %v96_v43 }
  0x9d   :  { %v98_v46 = vsub.f32 %v69_v44, %v97_v45 }
  0x9f   :  { %v99_v47 = vmax.f32 %v98_v46, 1e-05 }
  0xa1   :  { %v100_v48 = vmin.f32 %v99_v47, 3.465736 }
  0xa3   :  { %102 = vst.msk [vmem:[%s207_s2] sm:$0xff] %vm101_vm9, %v100_v48 }
  0xa4   :  { %107 = vsyncpa [#allocation3], 1 }
  0xa5   :  { %108 = vsyncpa [#allocation5], 1 }

</bundles_post_ra>
